<compile_context>
chip_gen: v7x
topology: tpu7x:2x2x1
jax: 0.10.0
libtpu: 0.0.40
codegen_flags: <defaults>
</compile_context>

<pallas_src>
import functools

import jax
import jax.numpy as jnp
from jax.experimental import pallas as pl
from jax.experimental.pallas import tpu as pltpu


def _round_up(a, b):
    return (a + b - 1) // b * b


def _cdiv(a, b):
    return (a + b - 1) // b


def _vmem_capacity_bytes():
    try:
        cap = int(pltpu.get_tpu_info().vmem_capacity_bytes)
        if cap > 0:
            return cap
    except Exception:
        pass
    return 64 * 1024 * 1024  # conservative fallback (v7x-sized)


_VMEM_CAP = _vmem_capacity_bytes()
# Never request the full physical capacity; leave >=16 MiB headroom.
_VMEM_REQUEST_CAP = max(_VMEM_CAP - 16 * 1024 * 1024, 16 * 1024 * 1024)
# Sizing budget: ~75% of physical (~48 MiB on v7x, ~96 MiB on v5e/v6e).
_VMEM_BUDGET = min(int(0.75 * _VMEM_CAP), _VMEM_REQUEST_CAP)


def _silu(h):
    # exp and the approximate reciprocal both go to the EUP slot (off the VALU).
    return h * pl.reciprocal(1.0 + jnp.exp(-h), approx=True)


def _ffn_resident_kernel(x_ref, w1_ref, b1_ref, w2_ref, b2_ref, o_ref):
    # x_ref: (tm, dim_p); weights/biases resident (constant index, Buffered(1)).
    h = jnp.dot(x_ref[...], w1_ref[...], preferred_element_type=jnp.float32)
    h = _silu(h + b1_ref[...])
    # Dropout: inference-mode identity.
    y = jnp.dot(h.astype(w2_ref.dtype), w2_ref[...],
                preferred_element_type=jnp.float32)
    o_ref[...] = (y + b2_ref[...]).astype(o_ref.dtype)


def _ffn_streamed_kernel(x_ref, w1_ref, b1_ref, w2_ref, b2_ref, o_ref, acc_ref):
    # Grid: (row tiles i, mlp tiles k).  W1/W2 stream as (dim_p, tn)/(tn, dim_p)
    # slabs; acc_ref is an f32 (tm, dim_p) accumulator with b2 folded into init.
    k = pl.program_id(1)

    @pl.when(k == 0)
    def _():
        acc_ref[...] = jnp.broadcast_to(b2_ref[...], acc_ref.shape)

    h = jnp.dot(x_ref[...], w1_ref[...], preferred_element_type=jnp.float32)
    h = _silu(h + b1_ref[...])
    # Dropout: inference-mode identity.
    acc_ref[...] += jnp.dot(h.astype(w2_ref.dtype), w2_ref[...],
                            preferred_element_type=jnp.float32)

    @pl.when(k == pl.num_programs(1) - 1)
    def _():
        o_ref[...] = acc_ref[...].astype(o_ref.dtype)


@functools.partial(jax.jit, static_argnames=("tm", "mxu_bf16", "force_path"))
def feed_forward(x, w1, b1, w2, b2, *, tm=512, mxu_bf16=False, force_path=None):
    """x: (..., dim). Weights are (in, out); returns same shape/dtype as x."""
    orig_shape = x.shape
    out_dtype = x.dtype
    dim = x.shape[-1]
    mlp_dim = w1.shape[-1]

    x2 = x.reshape(-1, dim)
    m = x2.shape[0]

    # Optional bf16 MXU operands (f32 accumulation kept) — v6e/v7x fast path.
    if mxu_bf16:
        if x2.dtype == jnp.float32:
            x2 = x2.astype(jnp.bfloat16)
        if w1.dtype == jnp.float32:
            w1 = w1.astype(jnp.bfloat16)
            w2 = w2.astype(jnp.bfloat16)

    xb = x2.dtype.itemsize
    wb = w1.dtype.itemsize

    # Lane-dense padding: last dims become multiples of 128.
    dim_p = _round_up(dim, 128)
    mlp_p = _round_up(mlp_dim, 128)

    budget = _VMEM_BUDGET
    tm_req = max(16, _round_up(tm, 16))
    m16 = _round_up(m, 16)

    # ---- Path selection ---------------------------------------------------
    # Resident path: W1/W2 live single-buffered in VMEM for the whole grid;
    # only x/out tiles stream.  Fixed footprint does not depend on tm, so size
    # tm against the remainder of the budget.
    fixed_resident = 2 * dim_p * mlp_p * wb + (mlp_p + dim_p) * 4
    per_row_resident = 4 * dim_p * xb + (mlp_p + dim_p) * 4
    avail = budget - fixed_resident
    t_res = 0
    if avail > 0:
        t_res = min((avail // per_row_resident) // 16 * 16, tm_req)

    if force_path == "resident":
        use_resident = True
    elif force_path == "streamed":
        use_resident = False
    else:
        use_resident = t_res >= min(128, m16)

    if use_resident:
        tm_cap = max(t_res, 16)
        tn = mlp_p
        mlp_pp = mlp_p
    else:
        # Streamed path: tile mlp_dim; shrink tn then tm until it fits.
        tn = min(512, mlp_p)
        tm_cap = tm_req

        def streamed_vmem(t, n):
            return (4 * t * dim_p * xb                 # x + out tiles (2x buffered)
                    + 2 * (dim_p * n + n * dim_p) * wb  # W1/W2 slabs (2x buffered)
                    + 2 * n * 4 + dim_p * 4             # b1 slab + b2
                    + t * dim_p * 4                     # f32 accumulator scratch
                    + t * n * 4)                        # f32 intermediate h

        while tn > 128 and streamed_vmem(tm_cap, tn) > budget:
            tn = max(128, (tn // 2) // 128 * 128)
        while tm_cap > 16 and streamed_vmem(tm_cap, tn) > budget:
            tm_cap = max(16, (tm_cap // 2) // 16 * 16)
        mlp_pp = _round_up(mlp_p, tn)

    # ---- Row tiling: balance tiles, keep >=2 grid steps for v7x megacore ---
    tm_cap = max(16, min(tm_cap, m16))
    n_row = _cdiv(m16, tm_cap)
    if m16 >= 32:
        n_row = max(n_row, 2)
    tm_eff = _round_up(_cdiv(m16, n_row), 16)
    m_p = _round_up(m, tm_eff)
    n_row = m_p // tm_eff

    # ---- Padding (zero padding is inert: silu(0)=0, zero weight rows/cols) --
    x_pad = jnp.pad(x2, ((0, m_p - m), (0, dim_p - dim)))
    w1_pad = jnp.pad(w1, ((0, dim_p - dim), (0, mlp_pp - mlp_dim)))
    w2_pad = jnp.pad(w2, ((0, mlp_pp - mlp_dim), (0, dim_p - dim)))
    b1_pad = jnp.pad(b1.astype(jnp.float32).reshape(1, mlp_dim),
                     ((0, 0), (0, mlp_pp - mlp_dim)))
    b2_pad = jnp.pad(b2.astype(jnp.float32).reshape(1, dim),
                     ((0, 0), (0, dim_p - dim)))

    # ---- Cost / VMEM request ------------------------------------------------
    if use_resident:
        est = fixed_resident + tm_eff * per_row_resident
        weight_reads = 1
    else:
        est = streamed_vmem(tm_eff, tn)
        weight_reads = n_row  # slabs re-streamed for every row tile

    bytes_accessed = (
        x_pad.size * xb
        + m_p * dim_p * jnp.dtype(out_dtype).itemsize
        + weight_reads * (w1_pad.size + w2_pad.size) * wb
        + (b1_pad.size + b2_pad.size) * 4
    )
    cost = pl.CostEstimate(
        flops=int(4 * m * dim * mlp_dim),
        transcendentals=int(2 * m * mlp_dim),
        bytes_accessed=int(bytes_accessed),
    )
    vmem_limit = int(min(max(est + est // 4 + (4 << 20), 32 << 20),
                         _VMEM_REQUEST_CAP))

    resident_mode = pl.Buffered(1)  # constant-index blocks: no double-buffering

    if use_resident:
        grid = (n_row,)
        in_specs = [
            pl.BlockSpec((tm_eff, dim_p), lambda i: (i, 0)),
            pl.BlockSpec((dim_p, mlp_pp), lambda i: (0, 0),
                         pipeline_mode=resident_mode),
            pl.BlockSpec((1, mlp_pp), lambda i: (0, 0),
                         pipeline_mode=resident_mode),
            pl.BlockSpec((mlp_pp, dim_p), lambda i: (0, 0),
                         pipeline_mode=resident_mode),
            pl.BlockSpec((1, dim_p), lambda i: (0, 0),
                         pipeline_mode=resident_mode),
        ]
        out_specs = pl.BlockSpec((tm_eff, dim_p), lambda i: (i, 0))
        scratch_shapes = []
        kernel = _ffn_resident_kernel
        dim_sem = ("parallel",)
    else:
        nk = mlp_pp // tn
        grid = (n_row, nk)
        in_specs = [
            pl.BlockSpec((tm_eff, dim_p), lambda i, k: (i, 0)),
            pl.BlockSpec((dim_p, tn), lambda i, k: (0, k)),
            pl.BlockSpec((1, tn), lambda i, k: (0, k)),
            pl.BlockSpec((tn, dim_p), lambda i, k: (k, 0)),
            pl.BlockSpec((1, dim_p), lambda i, k: (0, 0),
                         pipeline_mode=resident_mode),
        ]
        out_specs = pl.BlockSpec((tm_eff, dim_p), lambda i, k: (i, 0))
        scratch_shapes = [pltpu.VMEM((tm_eff, dim_p), jnp.float32)]
        kernel = _ffn_streamed_kernel
        dim_sem = ("parallel", "arbitrary")

    out = pl.pallas_call(
        kernel,
        out_shape=jax.ShapeDtypeStruct((m_p, dim_p), out_dtype),
        grid_spec=pltpu.PrefetchScalarGridSpec(
            num_scalar_prefetch=0,
            grid=grid,
            in_specs=in_specs,
            out_specs=out_specs,
            scratch_shapes=scratch_shapes,
        ),
        compiler_params=pltpu.CompilerParams(
            dimension_semantics=dim_sem,
            vmem_limit_bytes=vmem_limit,
        ),
        cost_estimate=cost,
    )(x_pad, w1_pad, b1_pad, w2_pad, b2_pad)

    return out[:m, :dim].reshape(orig_shape)


def init_params(key, dim, mlp_dim, dtype=jnp.float32):
    """Deterministic synthetic params.

    PyTorch nn.Linear stores weight as (out, in); we keep the transposed
    (in, out) layout so the kernel computes x @ W directly.
    """
    k1, k2, k3, k4 = jax.random.split(key, 4)
    bound1 = 1.0 / (dim ** 0.5)
    bound2 = 1.0 / (mlp_dim ** 0.5)
    w1 = jax.random.uniform(k1, (dim, mlp_dim), dtype, -bound1, bound1)
    b1 = jax.random.uniform(k2, (mlp_dim,), dtype, -bound1, bound1)
    w2 = jax.random.uniform(k3, (mlp_dim, dim), dtype, -bound2, bound2)
    b2 = jax.random.uniform(k4, (dim,), dtype, -bound2, bound2)
    return w1, b1, w2, b2


def _reference(x, w1, b1, w2, b2):
    h = x @ w1 + b1
    h = h * jax.nn.sigmoid(h)
    return h @ w2 + b2


if __name__ == "__main__":
    key = jax.random.PRNGKey(0)
    kx, kp, kx2, kp2, kx3, kp3 = jax.random.split(key, 6)

    # Tolerances: SiLU uses the approximate EUP reciprocal, so allow a small
    # deviation from the exact f32 reference.
    TOL = dict(atol=5e-3, rtol=5e-3)

    # 1) Small shapes consistent with the module: (batch, seq, dim).
    B, N, DIM, MLP_DIM = 2, 8, 32, 64
    x = jax.random.normal(kx, (B, N, DIM), jnp.float32)
    p = init_params(kp, DIM, MLP_DIM)
    y = jax.block_until_ready(feed_forward(x, *p))
    y_ref = _reference(x, *p)
    assert y.shape == x.shape and y.dtype == x.dtype
    assert jnp.allclose(y, y_ref, **TOL)

    # 2) Ragged row count + padded dims + multi-step (balanced) row grid.
    B2, N2, DIM2, MLP2 = 2, 200, 96, 192
    x2 = jax.random.normal(kx2, (B2, N2, DIM2), jnp.float32)
    p2 = init_params(kp2, DIM2, MLP2)
    y2 = jax.block_until_ready(feed_forward(x2, *p2))
    y2_ref = _reference(x2, *p2)
    assert y2.shape == x2.shape and y2.dtype == x2.dtype
    assert jnp.allclose(y2, y2_ref, **TOL)

    # 3) Streamed (mlp-tiled, accumulator) path: force it so the 2-D grid with
    #    k-accumulation is exercised (mlp_p=1024, tn=512 -> 2 k-steps).
    B3, N3, DIM3, MLP3 = 2, 64, 128, 1024
    x3 = jax.random.normal(kx3, (B3, N3, DIM3), jnp.float32)
    p3 = init_params(kp3, DIM3, MLP3)
    y3 = jax.block_until_ready(feed_forward(x3, *p3, force_path="streamed"))
    y3_ref = _reference(x3, *p3)
    assert y3.shape == x3.shape and y3.dtype == x3.dtype
    assert jnp.allclose(y3, y3_ref, **TOL)

    # 4) bf16-MXU fast path (v6e/v7x): looser tolerance for bf16 rounding.
    y4 = jax.block_until_ready(feed_forward(x2, *p2, mxu_bf16=True))
    assert y4.shape == x2.shape and y4.dtype == x2.dtype
    assert jnp.allclose(y4, y2_ref, atol=5e-2, rtol=5e-2)

    print("KERNEL_OK")
</pallas_src>

<mosaic_0001>
module attributes {stable_mosaic.version = 11 : i64} {
  func.func @_ffn_resident_kernel(%arg0: i32, %arg1: memref<16x128xf32, #tpu.memory_space<vmem>>, %arg2: memref<128x128xf32, #tpu.memory_space<vmem>>, %arg3: memref<1x128xf32, #tpu.memory_space<vmem>>, %arg4: memref<128x128xf32, #tpu.memory_space<vmem>>, %arg5: memref<1x128xf32, #tpu.memory_space<vmem>>, %arg6: memref<16x128xf32, #tpu.memory_space<vmem>>) attributes {dimension_semantics = [#tpu.dimension_semantics<parallel>], iteration_bounds = array<i64: 1>, scalar_prefetch = 0 : i64, scratch_operands = 0 : i64, tpu.core_type = #tpu.core_type<tc>, window_params = [{transform_indices = @transform_0, window_bounds = array<i64: 16, 128>}, {pipeline_mode = #tpu.pipeline_mode<synchronous>, transform_indices = @transform_1, window_bounds = array<i64: 128, 128>}, {pipeline_mode = #tpu.pipeline_mode<synchronous>, transform_indices = @transform_2, window_bounds = array<i64: 1, 128>}, {pipeline_mode = #tpu.pipeline_mode<synchronous>, transform_indices = @transform_3, window_bounds = array<i64: 128, 128>}, {pipeline_mode = #tpu.pipeline_mode<synchronous>, transform_indices = @transform_4, window_bounds = array<i64: 1, 128>}, {transform_indices = @transform_5, window_bounds = array<i64: 16, 128>}]} {
    %c0 = arith.constant 0 : index
    %c0_0 = arith.constant 0 : index
    %0 = vector.load %arg1[%c0, %c0_0] : memref<16x128xf32, #tpu.memory_space<vmem>>, vector<16x128xf32>
    %c0_1 = arith.constant 0 : index
    %c0_2 = arith.constant 0 : index
    %1 = vector.load %arg2[%c0_1, %c0_2] : memref<128x128xf32, #tpu.memory_space<vmem>>, vector<128x128xf32>
    %cst = arith.constant dense<0.000000e+00> : vector<16x128xf32>
    %2 = tpu.matmul %0, %1, %cst {dimension_numbers = #tpu.dot_dimension_numbers<[1], [0], [0], [1], [0, 0, 1, 1], [], []>} : vector<16x128xf32>, vector<128x128xf32>, vector<16x128xf32> -> vector<16x128xf32>
    %c0_3 = arith.constant 0 : index
    %c0_4 = arith.constant 0 : index
    %3 = vector.load %arg3[%c0_3, %c0_4] : memref<1x128xf32, #tpu.memory_space<vmem>>, vector<1x128xf32>
    %4 = vector.broadcast %3 : vector<1x128xf32> to vector<16x128xf32>
    %5 = arith.addf %2, %4 : vector<16x128xf32>
    %cst_5 = arith.constant 0.000000e+00 : f32
    %6 = vector.broadcast %cst_5 : f32 to vector<16x128xf32>
    %7 = arith.subf %6, %5 : vector<16x128xf32>
    %8 = math.exp %7 : vector<16x128xf32>
    %cst_6 = arith.constant 1.000000e+00 : f32
    %9 = vector.broadcast %cst_6 : f32 to vector<16x128xf32>
    %10 = arith.addf %9, %8 : vector<16x128xf32>
    %11 = tpu.reciprocal %10 {approx = true} : vector<16x128xf32> -> vector<16x128xf32>
    %12 = arith.mulf %5, %11 : vector<16x128xf32>
    %c0_7 = arith.constant 0 : index
    %c0_8 = arith.constant 0 : index
    %13 = vector.load %arg4[%c0_7, %c0_8] : memref<128x128xf32, #tpu.memory_space<vmem>>, vector<128x128xf32>
    %cst_9 = arith.constant dense<0.000000e+00> : vector<16x128xf32>
    %14 = tpu.matmul %12, %13, %cst_9 {dimension_numbers = #tpu.dot_dimension_numbers<[1], [0], [0], [1], [0, 0, 1, 1], [], []>} : vector<16x128xf32>, vector<128x128xf32>, vector<16x128xf32> -> vector<16x128xf32>
    %c0_10 = arith.constant 0 : index
    %c0_11 = arith.constant 0 : index
    %15 = vector.load %arg5[%c0_10, %c0_11] : memref<1x128xf32, #tpu.memory_space<vmem>>, vector<1x128xf32>
    %16 = vector.broadcast %15 : vector<1x128xf32> to vector<16x128xf32>
    %17 = arith.addf %14, %16 : vector<16x128xf32>
    %c0_12 = arith.constant 0 : index
    %c0_13 = arith.constant 0 : index
    %18 = vector.load %arg6[%c0_12, %c0_13] : memref<16x128xf32, #tpu.memory_space<vmem>>, vector<16x128xf32>
    tpu.vector_store %arg6[%c0_12, %c0_13], %17 {strides = array<i32>} : memref<16x128xf32, #tpu.memory_space<vmem>>, vector<16x128xf32>,
    return
  }
  func.func @transform_0(%arg0: i32) -> (i32, i32) {
    %c0_i32 = arith.constant 0 : i32
    %c0_i32_0 = arith.constant 0 : i32
    return %arg0, %c0_i32 : i32, i32
  }
  func.func @transform_1(%arg0: i32) -> (i32, i32) {
    %c0_i32 = arith.constant 0 : i32
    %c0_i32_0 = arith.constant 0 : i32
    %c0_i32_1 = arith.constant 0 : i32
    return %c0_i32, %c0_i32_0 : i32, i32
  }
  func.func @transform_2(%arg0: i32) -> (i32, i32) {
    %c0_i32 = arith.constant 0 : i32
    %c0_i32_0 = arith.constant 0 : i32
    %c0_i32_1 = arith.constant 0 : i32
    return %c0_i32, %c0_i32_0 : i32, i32
  }
  func.func @transform_3(%arg0: i32) -> (i32, i32) {
    %c0_i32 = arith.constant 0 : i32
    %c0_i32_0 = arith.constant 0 : i32
    %c0_i32_1 = arith.constant 0 : i32
    return %c0_i32, %c0_i32_0 : i32, i32
  }
  func.func @transform_4(%arg0: i32) -> (i32, i32) {
    %c0_i32 = arith.constant 0 : i32
    %c0_i32_0 = arith.constant 0 : i32
    %c0_i32_1 = arith.constant 0 : i32
    return %c0_i32, %c0_i32_0 : i32, i32
  }
  func.func @transform_5(%arg0: i32) -> (i32, i32) {
    %c0_i32 = arith.constant 0 : i32
    %c0_i32_0 = arith.constant 0 : i32
    return %arg0, %c0_i32 : i32, i32
  }
}

</mosaic_0001>

<bundles_post_ra>
// kernel: feed_forward.1
= control target key start
LH: loop header
LB: loop body
LE: loop exit
PB: predicated region body
PF: predicated region fallthrough
CT: control target
= control target key end

     0   :  { %s560_s1 = inlined_call_operand.vmem [shape: f32[128,128], index: 1, kind: input, shape index: {}]   ;;  %s561_s0 = inlined_call_operand.vmem [shape: f32[16,128], index: 0, kind: input, shape index: {}]   ;;  %s562_s3 = inlined_call_operand.vmem [shape: f32[128,128], index: 3, kind: input, shape index: {}]   ;;  %s563_s2 = inlined_call_operand.vmem [shape: f32[1,128], index: 2, kind: input, shape index: {}]   ;;  %s564_s4 = inlined_call_operand.vmem [shape: f32[1,128], index: 4, kind: input, shape index: {}]   ;;  %s565_s5 = inlined_call_operand.vmem [shape: f32[16,128], index: 5, kind: output, shape index: {}]  }
   0x1   :  { %v22_v0 = vld [vmem:[%s560_s1] sm:$0xff]  ;;  %v23_v1 = vld [vmem:[%s560_s1 + $0x8] sm:$0xff]  ;;  %v24_v2 = vld [vmem:[%s560_s1 + $0x10] sm:$0xff] }
   0x2   :  { %v344_v3 = vpack.c.bf16 %v23_v1, %v22_v0  ;;  %v25_v4 = vld [vmem:[%s560_s1 + $0x18] sm:$0xff]  ;;  %v26_v6 = vld [vmem:[%s560_s1 + $0x20] sm:$0xff]  ;;  %v27_v7 = vld [vmem:[%s560_s1 + $0x28] sm:$0xff] }
   0x3   :  { %v348_v5 = vpack.c.bf16 %v25_v4, %v24_v2  ;;  %v352_v8 = vpack.c.bf16 %v27_v7, %v26_v6  ;;  %v20_v9 = vld [vmem:[%s561_s0] sm:$0xff]  ;;  %v28_v10 = vld [vmem:[%s560_s1 + $0x30] sm:$0xff]  ;;  %v29_v11 = vld [vmem:[%s560_s1 + $0x38] sm:$0xff] }
   0x4   :  { %345 = vmatprep.subr.bf16.mxu0 %v344_v3  ;;  %306 = vmatprep.mubr.f32.mxu0 %v20_v9  ;;  %v356_v12 = vpack.c.bf16 %v29_v11, %v28_v10  ;;  %v30_v13 = vld [vmem:[%s560_s1 + $0x40] sm:$0xff]  ;;  %v31_v14 = vld [vmem:[%s560_s1 + $0x48] sm:$0xff]  ;;  %v32_v16 = vld [vmem:[%s560_s1 + $0x50] sm:$0xff] }
   0x5   :  { %347 = vmatpush3.bf16.msra.mxu0 %v344_v3  ;;  %v360_v15 = vpack.c.bf16 %v31_v14, %v30_v13  ;;  %v33_v17 = vld [vmem:[%s560_s1 + $0x58] sm:$0xff]  ;;  %v34_v19 = vld [vmem:[%s560_s1 + $0x60] sm:$0xff]  ;;  %v35_v20 = vld [vmem:[%s560_s1 + $0x68] sm:$0xff] }
   0x6   :  { %349 = vmatprep.subr.bf16.mxu0 %v348_v5  ;;  %v364_v18 = vpack.c.bf16 %v33_v17, %v32_v16  ;;  %v368_v21 = vpack.c.bf16 %v35_v20, %v34_v19  ;;  %v36_v22 = vld [vmem:[%s560_s1 + $0x70] sm:$0xff]  ;;  %v37_v23 = vld [vmem:[%s560_s1 + $0x78] sm:$0xff]  ;;  %v21_v25 = vld [vmem:[%s561_s0 + $0x8] sm:$0xff] }
   0x7   :  { %v372_v24 = vpack.c.bf16 %v37_v23, %v36_v22  ;;  %v132_v26 = vld [vmem:[%s562_s3] sm:$0xff]  ;;  %v133_v27 = vld [vmem:[%s562_s3 + $0x8] sm:$0xff]  ;;  %v134_v29 = vld [vmem:[%s562_s3 + $0x10] sm:$0xff] }
   0x8   :  { %v376_v28 = vpack.c.bf16 %v133_v27, %v132_v26  ;;  %v135_v30 = vld [vmem:[%s562_s3 + $0x18] sm:$0xff]  ;;  %v136_v32 = vld [vmem:[%s562_s3 + $0x20] sm:$0xff]  ;;  %v137_v33 = vld [vmem:[%s562_s3 + $0x28] sm:$0xff] }
   0x9   :  { %351 = vmatpush3.bf16.msra.mxu0 %v348_v5  ;;  %v380_v31 = vpack.c.bf16 %v135_v30, %v134_v29  ;;  %v384_v34 = vpack.c.bf16 %v137_v33, %v136_v32  ;;  %v138_v35 = vld [vmem:[%s562_s3 + $0x30] sm:$0xff]  ;;  %v139_v36 = vld [vmem:[%s562_s3 + $0x38] sm:$0xff]  ;;  %v140_v38 = vld [vmem:[%s562_s3 + $0x40] sm:$0xff] }
   0xa   :  { %353 = vmatprep.subr.bf16.mxu0 %v352_v8  ;;  %377 = vmatprep.subr.bf16.mxu1 %v376_v28  ;;  %v388_v37 = vpack.c.bf16 %v139_v36, %v138_v35  ;;  %v141_v39 = vld [vmem:[%s562_s3 + $0x48] sm:$0xff]  ;;  %v142_v41 = vld [vmem:[%s562_s3 + $0x50] sm:$0xff]  ;;  %v143_v42 = vld [vmem:[%s562_s3 + $0x58] sm:$0xff] }
   0xb   :  { %379 = vmatpush3.bf16.msra.mxu1 %v376_v28  ;;  %v392_v40 = vpack.c.bf16 %v141_v39, %v140_v38  ;;  %v396_v43 = vpack.c.bf16 %v143_v42, %v142_v41  ;;  %v144_v44 = vld [vmem:[%s562_s3 + $0x60] sm:$0xff]  ;;  %v145_v45 = vld [vmem:[%s562_s3 + $0x68] sm:$0xff]  ;;  %v146_v47 = vld [vmem:[%s562_s3 + $0x70] sm:$0xff] }
   0xc   :  { %381 = vmatprep.subr.bf16.mxu1 %v380_v31  ;;  %v400_v46 = vpack.c.bf16 %v145_v45, %v144_v44  ;;  %v147_v48 = vld [vmem:[%s562_s3 + $0x78] sm:$0xff]  ;;  %v236_v50 = vld [vmem:[%s563_s2] ss:$0 sm:$0xff] }
   0xd   :  { %355 = vmatpush3.bf16.msra.mxu0 %v352_v8  ;;  %v404_v49 = vpack.c.bf16 %v147_v48, %v146_v47  ;;  %v237_v3 = vld [vmem:[%s564_s4] ss:$0 sm:$0xff] }
   0xe   :  { %357 = vmatprep.subr.bf16.mxu0 %v356_v12 }
   0xf   :  { %383 = vmatpush3.bf16.msra.mxu1 %v380_v31 }
  0x10   :  { %385 = vmatprep.subr.bf16.mxu1 %v384_v34 }
  0x11   :  { %359 = vmatpush3.bf16.msra.mxu0 %v356_v12 }
  0x12   :  { %361 = vmatprep.subr.bf16.mxu0 %v360_v15 }
  0x13   :  { %387 = vmatpush3.bf16.msra.mxu1 %v384_v34 }
  0x14   :  { %389 = vmatprep.subr.bf16.mxu1 %v388_v37 }
  0x15   :  { %363 = vmatpush3.bf16.msra.mxu0 %v360_v15 }
  0x16   :  { %365 = vmatprep.subr.bf16.mxu0 %v364_v18 }
  0x17   :  { %391 = vmatpush3.bf16.msra.mxu1 %v388_v37 }
  0x18   :  { %393 = vmatprep.subr.bf16.mxu1 %v392_v40 }
  0x19   :  { %367 = vmatpush3.bf16.msra.mxu0 %v364_v18 }
  0x1a   :  { %369 = vmatprep.subr.bf16.mxu0 %v368_v21 }
  0x1b   :  { %395 = vmatpush3.bf16.msra.mxu1 %v392_v40 }
  0x1c   :  { %397 = vmatprep.subr.bf16.mxu1 %v396_v43 }
  0x1d   :  { %371 = vmatpush3.bf16.msra.mxu0 %v368_v21 }
  0x1e   :  { %373 = vmatprep.subr.bf16.mxu0 %v372_v24 }
  0x1f   :  { %399 = vmatpush3.bf16.msra.mxu1 %v396_v43 }
  0x20   :  { %401 = vmatprep.subr.bf16.mxu1 %v400_v46 }
  0x21   :  { %375 = vmatpush3.bf16.msra.mxu0 %v372_v24 }
  0x23   :  { %403 = vmatpush3.bf16.msra.mxu1 %v400_v46 }
  0x24   :  { %307 = vmatmul.mubr.f32.vlgmr.msra.gmra.mrb[0].mxu0 %v21_v25  ;;  %405 = vmatprep.subr.bf16.mxu1 %v404_v49 }
  0x27   :  { %407 = vmatpush3.bf16.msra.mxu1 %v404_v49 }
  0xf7   :  { %v308_v51 = vpop.f32.mrb[0].mxu0 }
  0xf8   :  { %v117_v52 = vadd.f32 %v308_v51, %v236_v50  ;;  %v111_v53 = vpop.f32.mrb[1].mxu0 }
  0xf9   :  { %v112_v54 = vadd.f32 %v236_v50, %v111_v53 }
  0xfa   :  { %v121_v55 = vsub.f32 0.0, %v117_v52 }
  0xfb   :  { %v120_v56 = vsub.f32 0.0, %v112_v54 }
  0xfc   :  { %v124_v57 = vmul.f32 1.442695, %v121_v55 }
  0xfd   :  { %v122_v58 = vmul.f32 1.442695, %v120_v56 }
  0xfe   :  { %408 = vpow2.f32 %v124_v57 }
  0xff   :  { %410 = vpow2.f32 %v122_v58 }
 0x108   :  { %v409_v59 = vpop.eup %408 }
 0x109   :  { %v411_v60 = vpop.eup %410  ;;  %v127_v61 = vadd.f32 1.0, %v409_v59 }
 0x10a   :  { %v126_v62 = vadd.f32 1.0, %v411_v60 }
 0x10b   :  { %412 = vrcp.f32 %v127_v61 }
 0x10c   :  { %414 = vrcp.f32 %v126_v62 }
 0x115   :  { %v413_v63 = vpop.eup %412 }
 0x116   :  { %v415_v0 = vpop.eup %414  ;;  %v131_v2 = vmul.f32 %v413_v63, %v117_v52 }
 0x117   :  { %v130_v1 = vmul.f32 %v415_v0, %v112_v54 }
 0x119   :  { %341 = vmatprep.mubr.f32.mxu1 %v130_v1 }
 0x11a   :  { %342 = vmatmul.mubr.f32.vlgmr.msra.gmra.mrb[0].mxu1 %v131_v2 }
 0x1ed   :  { %v343_v4 = vpop.f32.mrb[0].mxu1 }
 0x1ee   :  { %v227_v5 = vadd.f32 %v343_v4, %v237_v3  ;;  %v221_v6 = vpop.f32.mrb[1].mxu1 }
 0x1ef   :  { %v222_v7 = vadd.f32 %v237_v3, %v221_v6 }
 0x1f0   :  { %231 = vst [vmem:[%s565_s5 + $0x8] sm:$0xff] %v227_v5 }
 0x1f1   :  { %230 = vst [vmem:[%s565_s5] sm:$0xff] %v222_v7 }

</bundles_post_ra>
